<compile_context>
chip_gen: v7x
topology: tpu7x:2x2x1
jax: 0.10.0
libtpu: 0.0.40
codegen_flags: <defaults>
</compile_context>

<pallas_src>
import functools

import jax
import jax.numpy as jnp
from jax.experimental import pallas as pl
from jax.experimental.pallas import tpu as pltpu

_SUBLANE = 8
_LANE = 128


def _round_up(n, m):
    return (n + m - 1) // m * m


def prepare_params(w_ih, b_ih, w_hh, b_hh, fc_w, fc_b):
    """One-time weight prep (transpose / bias folding / lane padding).

    PyTorch parameter shapes: w_ih (H, D), b_ih (H,), w_hh (H, H), b_hh (H,),
    fc_w (O, H), fc_b (O,).  Call once outside the per-step forward so no
    transpose/cast ops run per call."""
    H, _ = w_ih.shape
    O = fc_w.shape[0]
    o_pad = _round_up(O, _LANE)

    wih_t = jnp.asarray(w_ih, jnp.float32).T                       # (D, H)
    whh_t = jnp.asarray(w_hh, jnp.float32).T                       # (H, H)
    b_sum = (jnp.asarray(b_ih, jnp.float32)
             + jnp.asarray(b_hh, jnp.float32)).reshape(1, H)       # (1, H)
    fcw_t = jnp.zeros((H, o_pad), jnp.float32)
    fcw_t = fcw_t.at[:, :O].set(jnp.asarray(fc_w, jnp.float32).T)  # (H, 128k)
    fcb = jnp.zeros((1, o_pad), jnp.float32)
    fcb = fcb.at[:, :O].set(jnp.asarray(fc_b, jnp.float32))        # (1, 128k)
    return wih_t, whh_t, b_sum, fcw_t, fcb


def _res_rnn_kernel(x_ref, wih_ref, whh_ref, b_ref, fcw_ref, fcb_ref, out_ref,
                    *, seq_len, batch_pad, res_depth):
    T, Bp = seq_len, batch_pad
    H = whh_ref.shape[0]

    # (5) Hoisted input projection for ALL timesteps: one MXU matmul + one
    #     bias add, completely off the serial recurrence.
    pre = (jnp.dot(x_ref[...], wih_ref[...],
                   preferred_element_type=jnp.float32)
           + b_ref[...])                                           # (T*Bp, H)

    # (2) Loop-invariant RHS read once.
    whh = whh_ref[...]                                             # (H, H)

    # (6) Value-carried state, statically unrolled recurrence.
    h = jnp.zeros((Bp, H), jnp.float32)   # h0
    ht = h                                # ht = h0
    hstart = None
    hn = None
    for i in range(T):
        # (1) Bp is a multiple of 8 -> slab starts on a sublane-tile boundary.
        hn = pre[i * Bp:(i + 1) * Bp, :] + jnp.dot(
            h, whh, preferred_element_type=jnp.float32)            # (Bp, H)
        if i == 0:
            hstart = hn                   # h is NOT updated on step 0
        elif i == T - 1:
            h = jnp.tanh(hn + hstart)
        elif res_depth == 1:
            h = jnp.tanh(hn + h)
        elif i % res_depth == 0:
            h = jnp.tanh(hn + ht)
            ht = hn
        else:
            h = jnp.tanh(hn)

    # (4) Final FC on the LAST pre-activation hn; (Bp, 128k) output -> full
    #     unmasked lane-dense store.
    out_ref[...] = (jnp.dot(hn, fcw_ref[...],
                            preferred_element_type=jnp.float32)
                    + fcb_ref[...]).astype(out_ref.dtype)


@functools.partial(jax.jit, static_argnames=("res_depth", "out_dim"))
def res_rnn_forward(x_btd, wih_t, whh_t, b_sum, fcw_t, fcb, *, res_depth,
                    out_dim):
    """x_btd: (B, T, D) batch-first (PyTorch layout). Returns (B, out_dim)."""
    B, T, D = x_btd.shape
    o_pad = fcw_t.shape[1]
    Bp = _round_up(max(B, _SUBLANE), _SUBLANE)

    # (3) Per-call prep is x only: time-major, batch padded to a full sublane
    #     tile, flattened so the i2h projection is one MXU matmul.
    x = jnp.asarray(x_btd, jnp.float32)
    x = jnp.transpose(x, (1, 0, 2))                     # (T, B, D)
    x = jnp.pad(x, ((0, 0), (0, Bp - B), (0, 0)))       # (T, Bp, D)
    x_flat = x.reshape(T * Bp, D)                       # (T*Bp, D)

    kernel = functools.partial(_res_rnn_kernel, seq_len=T, batch_pad=Bp,
                               res_depth=res_depth)
    vmem = pl.BlockSpec(memory_space=pltpu.MemorySpace.VMEM)
    out_pad = pl.pallas_call(
        kernel,
        out_shape=jax.ShapeDtypeStruct((Bp, o_pad), jnp.float32),
        in_specs=[vmem] * 6,
        out_specs=vmem,
    )(x_flat, wih_t, whh_t, b_sum, fcw_t, fcb)
    return out_pad[:B, :out_dim]


def reference_forward(x_btd, w_ih, b_ih, w_hh, b_hh, fc_w, fc_b, *, res_depth):
    """Pure-JAX mirror of ResRNNModel.forward (f32-accurate matmuls)."""
    B, T, _ = x_btd.shape
    H = w_hh.shape[0]
    hi = jax.lax.Precision.HIGHEST
    h0 = jnp.zeros((B, H), jnp.float32)
    ht = h0
    hstart = None
    hn = None
    for i in range(T):
        hn = (jnp.dot(x_btd[:, i, :], w_ih.T, precision=hi) + b_ih
              + jnp.dot(h0, w_hh.T, precision=hi) + b_hh)
        if i == 0:
            hstart = hn
        elif i == T - 1:
            h0 = jnp.tanh(hn + hstart)
        elif res_depth == 1:
            h0 = jnp.tanh(hn + h0)
        elif i % res_depth == 0:
            h0 = jnp.tanh(hn + ht)
            ht = hn
        else:
            h0 = jnp.tanh(hn)
    return jnp.dot(hn, fc_w.T, precision=hi) + fc_b


if __name__ == "__main__":
    # Module config: inputDim=4, hiddenNum=32, outputDim=4, layerNum=1
    B, T, D, H, O = 2, 8, 4, 32, 4

    key = jax.random.PRNGKey(0)
    ks = jax.random.split(key, 7)
    s = 1.0 / jnp.sqrt(H)
    x = jax.random.normal(ks[0], (B, T, D), jnp.float32)
    w_ih = jax.random.uniform(ks[1], (H, D), jnp.float32, -s, s)
    b_ih = jax.random.uniform(ks[2], (H,), jnp.float32, -s, s)
    w_hh = jax.random.uniform(ks[3], (H, H), jnp.float32, -s, s)
    b_hh = jax.random.uniform(ks[4], (H,), jnp.float32, -s, s)
    fc_w = jax.random.uniform(ks[5], (O, H), jnp.float32, -s, s)
    fc_b = jax.random.uniform(ks[6], (O,), jnp.float32, -s, s)

    # Weight prep happens ONCE (off the per-call path).
    params = prepare_params(w_ih, b_ih, w_hh, b_hh, fc_w, fc_b)

    # Exercise both the "i % resDepth == 0" path (resDepth=3) and the
    # "resDepth == 1" path.
    for res_depth in (3, 1):
        out = res_rnn_forward(x, *params, res_depth=res_depth, out_dim=O)
        out = jax.block_until_ready(out)
        ref = reference_forward(x, w_ih, b_ih, w_hh, b_hh, fc_w, fc_b,
                                res_depth=res_depth)
        assert out.shape == (B, O)
        assert jnp.allclose(out, ref, atol=1e-5, rtol=1e-5), (
            f"mismatch vs reference (resDepth={res_depth})")

    print("KERNEL_OK")
</pallas_src>

<mosaic_0001>
module attributes {stable_mosaic.version = 11 : i64} {
  func.func @_res_rnn_kernel(%arg0: memref<64x4xf32, #tpu.memory_space<vmem>>, %arg1: memref<4x32xf32, #tpu.memory_space<vmem>>, %arg2: memref<32x32xf32, #tpu.memory_space<vmem>>, %arg3: memref<1x32xf32, #tpu.memory_space<vmem>>, %arg4: memref<32x128xf32, #tpu.memory_space<vmem>>, %arg5: memref<1x128xf32, #tpu.memory_space<vmem>>, %arg6: memref<8x128xf32, #tpu.memory_space<vmem>>) attributes {dimension_semantics = [], scalar_prefetch = 0 : i64, scratch_operands = 0 : i64, tpu.core_type = #tpu.core_type<tc>} {
    %c0 = arith.constant 0 : index
    %c0_0 = arith.constant 0 : index
    %0 = vector.load %arg0[%c0, %c0_0] : memref<64x4xf32, #tpu.memory_space<vmem>>, vector<64x4xf32>
    %c0_1 = arith.constant 0 : index
    %c0_2 = arith.constant 0 : index
    %1 = vector.load %arg1[%c0_1, %c0_2] : memref<4x32xf32, #tpu.memory_space<vmem>>, vector<4x32xf32>
    %cst = arith.constant dense<0.000000e+00> : vector<64x32xf32>
    %2 = tpu.matmul %0, %1, %cst {dimension_numbers = #tpu.dot_dimension_numbers<[1], [0], [0], [1], [0, 0, 1, 1], [], []>} : vector<64x4xf32>, vector<4x32xf32>, vector<64x32xf32> -> vector<64x32xf32>
    %c0_3 = arith.constant 0 : index
    %c0_4 = arith.constant 0 : index
    %3 = vector.load %arg3[%c0_3, %c0_4] : memref<1x32xf32, #tpu.memory_space<vmem>>, vector<1x32xf32>
    %4 = vector.broadcast %3 : vector<1x32xf32> to vector<64x32xf32>
    %5 = arith.addf %2, %4 : vector<64x32xf32>
    %c0_5 = arith.constant 0 : index
    %c0_6 = arith.constant 0 : index
    %6 = vector.load %arg2[%c0_5, %c0_6] : memref<32x32xf32, #tpu.memory_space<vmem>>, vector<32x32xf32>
    %cst_7 = arith.constant 0.000000e+00 : f32
    %7 = vector.broadcast %cst_7 : f32 to vector<8x32xf32>
    %8 = vector.extract_strided_slice %5 {offsets = [8, 0], sizes = [8, 32], strides = [1, 1]} : vector<64x32xf32> to vector<8x32xf32>
    %cst_8 = arith.constant dense<0.000000e+00> : vector<8x32xf32>
    %9 = tpu.matmul %7, %6, %cst_8 {dimension_numbers = #tpu.dot_dimension_numbers<[1], [0], [0], [1], [0, 0, 1, 1], [], []>} : vector<8x32xf32>, vector<32x32xf32>, vector<8x32xf32> -> vector<8x32xf32>
    %10 = arith.addf %8, %9 : vector<8x32xf32>
    %11 = math.tanh %10 : vector<8x32xf32>
    %12 = vector.extract_strided_slice %5 {offsets = [16, 0], sizes = [8, 32], strides = [1, 1]} : vector<64x32xf32> to vector<8x32xf32>
    %cst_9 = arith.constant dense<0.000000e+00> : vector<8x32xf32>
    %13 = tpu.matmul %11, %6, %cst_9 {dimension_numbers = #tpu.dot_dimension_numbers<[1], [0], [0], [1], [0, 0, 1, 1], [], []>} : vector<8x32xf32>, vector<32x32xf32>, vector<8x32xf32> -> vector<8x32xf32>
    %14 = arith.addf %12, %13 : vector<8x32xf32>
    %15 = math.tanh %14 : vector<8x32xf32>
    %16 = vector.extract_strided_slice %5 {offsets = [24, 0], sizes = [8, 32], strides = [1, 1]} : vector<64x32xf32> to vector<8x32xf32>
    %cst_10 = arith.constant dense<0.000000e+00> : vector<8x32xf32>
    %17 = tpu.matmul %15, %6, %cst_10 {dimension_numbers = #tpu.dot_dimension_numbers<[1], [0], [0], [1], [0, 0, 1, 1], [], []>} : vector<8x32xf32>, vector<32x32xf32>, vector<8x32xf32> -> vector<8x32xf32>
    %18 = arith.addf %16, %17 : vector<8x32xf32>
    %19 = arith.addf %18, %7 : vector<8x32xf32>
    %20 = math.tanh %19 : vector<8x32xf32>
    %21 = vector.extract_strided_slice %5 {offsets = [32, 0], sizes = [8, 32], strides = [1, 1]} : vector<64x32xf32> to vector<8x32xf32>
    %cst_11 = arith.constant dense<0.000000e+00> : vector<8x32xf32>
    %22 = tpu.matmul %20, %6, %cst_11 {dimension_numbers = #tpu.dot_dimension_numbers<[1], [0], [0], [1], [0, 0, 1, 1], [], []>} : vector<8x32xf32>, vector<32x32xf32>, vector<8x32xf32> -> vector<8x32xf32>
    %23 = arith.addf %21, %22 : vector<8x32xf32>
    %24 = math.tanh %23 : vector<8x32xf32>
    %25 = vector.extract_strided_slice %5 {offsets = [40, 0], sizes = [8, 32], strides = [1, 1]} : vector<64x32xf32> to vector<8x32xf32>
    %cst_12 = arith.constant dense<0.000000e+00> : vector<8x32xf32>
    %26 = tpu.matmul %24, %6, %cst_12 {dimension_numbers = #tpu.dot_dimension_numbers<[1], [0], [0], [1], [0, 0, 1, 1], [], []>} : vector<8x32xf32>, vector<32x32xf32>, vector<8x32xf32> -> vector<8x32xf32>
    %27 = arith.addf %25, %26 : vector<8x32xf32>
    %28 = math.tanh %27 : vector<8x32xf32>
    %29 = vector.extract_strided_slice %5 {offsets = [48, 0], sizes = [8, 32], strides = [1, 1]} : vector<64x32xf32> to vector<8x32xf32>
    %cst_13 = arith.constant dense<0.000000e+00> : vector<8x32xf32>
    %30 = tpu.matmul %28, %6, %cst_13 {dimension_numbers = #tpu.dot_dimension_numbers<[1], [0], [0], [1], [0, 0, 1, 1], [], []>} : vector<8x32xf32>, vector<32x32xf32>, vector<8x32xf32> -> vector<8x32xf32>
    %31 = arith.addf %29, %30 : vector<8x32xf32>
    %32 = arith.addf %31, %18 : vector<8x32xf32>
    %33 = math.tanh %32 : vector<8x32xf32>
    %34 = vector.extract_strided_slice %5 {offsets = [56, 0], sizes = [8, 32], strides = [1, 1]} : vector<64x32xf32> to vector<8x32xf32>
    %cst_14 = arith.constant dense<0.000000e+00> : vector<8x32xf32>
    %35 = tpu.matmul %33, %6, %cst_14 {dimension_numbers = #tpu.dot_dimension_numbers<[1], [0], [0], [1], [0, 0, 1, 1], [], []>} : vector<8x32xf32>, vector<32x32xf32>, vector<8x32xf32> -> vector<8x32xf32>
    %36 = arith.addf %34, %35 : vector<8x32xf32>
    %c0_15 = arith.constant 0 : index
    %c0_16 = arith.constant 0 : index
    %37 = vector.load %arg4[%c0_15, %c0_16] : memref<32x128xf32, #tpu.memory_space<vmem>>, vector<32x128xf32>
    %cst_17 = arith.constant dense<0.000000e+00> : vector<8x128xf32>
    %38 = tpu.matmul %36, %37, %cst_17 {dimension_numbers = #tpu.dot_dimension_numbers<[1], [0], [0], [1], [0, 0, 1, 1], [], []>} : vector<8x32xf32>, vector<32x128xf32>, vector<8x128xf32> -> vector<8x128xf32>
    %c0_18 = arith.constant 0 : index
    %c0_19 = arith.constant 0 : index
    %39 = vector.load %arg5[%c0_18, %c0_19] : memref<1x128xf32, #tpu.memory_space<vmem>>, vector<1x128xf32>
    %40 = vector.broadcast %39 : vector<1x128xf32> to vector<8x128xf32>
    %41 = arith.addf %38, %40 : vector<8x128xf32>
    %c0_20 = arith.constant 0 : index
    %c0_21 = arith.constant 0 : index
    %42 = vector.load %arg6[%c0_20, %c0_21] : memref<8x128xf32, #tpu.memory_space<vmem>>, vector<8x128xf32>
    tpu.vector_store %arg6[%c0_20, %c0_21], %41 {strides = array<i32>} : memref<8x128xf32, #tpu.memory_space<vmem>>, vector<8x128xf32>,
    return
  }
}

</mosaic_0001>

<bundles_post_ra>
// kernel: res_rnn_forward.1
= control target key start
LH: loop header
LB: loop body
LE: loop exit
PB: predicated region body
PF: predicated region fallthrough
CT: control target
= control target key end

     0   :  { %vm64_vm0 = vcmask 1043456   ;;  %vm39_vm1 = vcmask 31744   ;;  %v1027_v3 = vmov 0.0|0.0   ;;  %vm1028_vm2 = vmmov 0   ;;  %s1194_s1 = inlined_call_operand.vmem [shape: f32[4,32], index: 1, kind: input, shape index: {}]   ;;  %s1195_s0 = inlined_call_operand.vmem [shape: f32[64,4], index: 0, kind: input, shape index: {}]   ;;  %s1196_s2 = inlined_call_operand.vmem [shape: f32[32,32], index: 2, kind: input, shape index: {}]   ;;  %s1197_s3 = inlined_call_operand.vmem [shape: f32[1,32], index: 3, kind: input, shape index: {}]   ;;  %s1198_s4 = inlined_call_operand.vmem [shape: f32[32,128], index: 4, kind: input, shape index: {}]   ;;  %s1199_s5 = inlined_call_operand.vmem [shape: f32[1,128], index: 5, kind: input, shape index: {}]   ;;  %s1200_s6 = inlined_call_operand.vmem [shape: f32[8,128], index: 6, kind: output, shape index: {}]  }
   0x1   :  { %v31_v0 = vld [vmem:[%s1194_s1] sm:$0xf]  ;;  %v24_v2 = vld [vmem:[%s1195_s0 + $0x8] sm:$0xff]  ;;  %967 = vmatprep.subr.bf16.mxu1 %v1027_v3  ;;  %v25_v6 = vld [vmem:[%s1195_s0 + $0x10] sm:$0xff]  ;;  %v1029_v8 = vmov 0.0   ;;  %vm176_vm3 = vcmask 261120  }
   0x2   :  { %v23_v1 = vld [vmem:[%s1195_s0] sm:$0xff]  ;;  %859 = vmatprep.subr.msk.mxu0 %vm64_vm0, %v31_v0  ;;  %v173_v5 = vld [vmem:[%s1196_s2 + $0x8] sm:$0xff]  ;;  %892 = vmatprep.mubr.msk.f32.mxu1 %vm1028_vm2, %v1029_v8  ;;  %v174_v9 = vld [vmem:[%s1196_s2 + $0x10] sm:$0xff] }
   0x3   :  { %861 = vmatprep.mubr.msk.f32.mxu0 %vm39_vm1, %v23_v1  ;;  %v172_v4 = vld [vmem:[%s1196_s2] sm:$0xff]  ;;  %860 = vmatpush3.msk.msra.mxu0 %vm64_vm0, %v31_v0  ;;  %v175_v10 = vld [vmem:[%s1196_s2 + $0x18] sm:$0xff]  ;;  %v28_v14 = vld [vmem:[%s1195_s0 + $0x28] sm:$0xff] }
   0x4   :  { %v1085_v7 = vpack.c.bf16 %v173_v5, %v172_v4  ;;  %862 = vmatmul.mubr.msk.f32.vlgmr.msra.gmra.mrb[0].mxu0 %vm39_vm1, %v24_v2  ;;  %961 = vmatprep.subr.bf16.mxu0 %v1027_v3  ;;  %v26_v11 = vld [vmem:[%s1195_s0 + $0x18] sm:$0xff]  ;;  %v1102_v12 = vpack.c.bf16 %v175_v10, %v174_v9  ;;  %v27_v13 = vld [vmem:[%s1195_s0 + $0x20] sm:$0xff]  ;;  %v29_v15 = vld [vmem:[%s1195_s0 + $0x30] sm:$0xff] }
   0x5   :  { %864 = vmatprep.mubr.msk.f32.mxu0 %vm39_vm1, %v25_v6  ;;  %v30_v16 = vld [vmem:[%s1195_s0 + $0x38] sm:$0xff]  ;;  %v792_v17 = vld [vmem:[%s1197_s3] ss:$0 sm:$0xff]  ;;  %v704_v51 = vld [vmem:[%s1198_s4 + $0x8] sm:$0xff] }
   0x6   :  { %963 = vmatpush3.bf16.msra.mxu0 %v1085_v7  ;;  %969 = vmatpush3.bf16.msra.mxu1 %v1085_v7  ;;  %v703_v50 = vld [vmem:[%s1198_s4] sm:$0xff]  ;;  %v705_v58 = vld [vmem:[%s1198_s4 + $0x10] sm:$0xff]  ;;  %v706_v59 = vld [vmem:[%s1198_s4 + $0x18] sm:$0xff] }
   0x7   :  { %964 = vmatprep.subr.bf16.mxu0 %v1027_v3  ;;  %970 = vmatprep.subr.bf16.mxu1 %v1027_v3  ;;  %v1004_v52 = vpack.c.bf16 %v704_v51, %v703_v50  ;;  %v1007_v60 = vpack.c.bf16 %v706_v59, %v705_v58  ;;  %v808_v0 = vld [vmem:[%s1199_s5] ss:$0 sm:$0xff] }
   0x8   :  { %865 = vmatmul.mubr.msk.f32.gmra.mrb[2].mxu0 %vm39_vm1, %v26_v11 }
   0x9   :  { %867 = vmatprep.mubr.msk.f32.mxu0 %vm39_vm1, %v27_v13 }
   0xa   :  { %966 = vmatpush3.bf16.msra.mxu0 %v1102_v12  ;;  %972 = vmatpush3.bf16.msra.mxu1 %v1102_v12 }
   0xb   :  { %985 = vmatprep.subr.bf16.mxu0 %v1027_v3  ;;  %973 = vmatprep.subr.bf16.mxu1 %v1027_v3 }
   0xc   :  { %868 = vmatmul.mubr.msk.f32.gmra.mrb[4].mxu0 %vm39_vm1, %v28_v14 }
   0xd   :  { %870 = vmatprep.mubr.msk.f32.mxu0 %vm39_vm1, %v29_v15 }
  0x10   :  { %871 = vmatmul.mubr.msk.f32.gmra.mrb[6].mxu0 %vm39_vm1, %v30_v16 }
  0x11   :  { %881 = vmatprep.mubr.msk.f32.mxu0 %vm1028_vm2, %v1029_v8 }
  0x14   :  { %882 = vmatmul.mubr.f32.vlgmr.msra.gmra.mrb[0].mxu0 %v1029_v8 }
  0x15   :  { %987 = vmatpush3.bf16.msra.mxu0 %v1085_v7  ;;  %925 = vmatprep.mubr.msk.f32.mxu0 %vm1028_vm2, %v1029_v8 }
  0x16   :  { %988 = vmatprep.subr.bf16.mxu0 %v1027_v3 }
  0x19   :  { %990 = vmatpush3.bf16.msra.mxu0 %v1102_v12 }
  0x1a   :  { %997 = vmatprep.subr.bf16.mxu0 %v1027_v3 }
  0xdb   :  { %v866_v18 = vpop.f32.mrb[2].mxu0 }
  0xdc   :  { %v149_v19 = vadd.f32 %v866_v18, %v792_v17  ;;  %v143_v20 = vpop.f32.mrb[3].mxu0 }
  0xdd   :  { %v144_v21 = vadd.f32 %v792_v17, %v143_v20 }
  0xdf   :  { %v869_v22 = vpop.f32.mrb[4].mxu0 }
  0xe0   :  { %v159_v23 = vadd.f32 %v869_v22, %v792_v17  ;;  %v153_v24 = vpop.f32.mrb[5].mxu0 }
  0xe1   :  { %v154_v25 = vadd.f32 %v792_v17, %v153_v24 }
  0xe3   :  { %v872_v26 = vpop.f32.mrb[6].mxu0 }
  0xe4   :  { %v1140_v27 = vadd.f32 %v872_v26, %v792_v17  ;;  %v163_v28 = vpop.f32.mrb[7].mxu0 }
  0xe5   :  { %v164_v29 = vadd.f32 %v792_v17, %v163_v28 }
  0xe7   :  { %v246_v30 = vpop.f32.mrb[0].mxu0 }
  0xe8   :  { %v1009_v31 = vadd.f32 %v792_v17, %v246_v30  ;;  %v883_v32 = vpop.f32.mrb[1].mxu0 }
  0xea   :  { %1015 = vtanh.f32 %v1009_v31 }
  0xf4   :  { %v1016_v33 = vpop.eup %1015 }
  0xf5   :  { %893 = vmatmul.mubr.msk.f32.vlgmr.msra.gmra.mrb[0].mxu1 %vm176_vm3, %v1016_v33 }
  0xf6   :  { %975 = vmatpush3.bf16.msra.mxu1 %v1085_v7  ;;  %903 = vmatprep.mubr.msk.f32.mxu1 %vm1028_vm2, %v1029_v8 }
  0xf7   :  { %976 = vmatprep.subr.bf16.mxu1 %v1027_v3 }
  0xfa   :  { %978 = vmatpush3.bf16.msra.mxu1 %v1102_v12 }
  0xfb   :  { %979 = vmatprep.subr.bf16.mxu1 %v1027_v3 }
 0x1c8   :  { %v321_v34 = vpop.f32.mrb[0].mxu1 }
 0x1c9   :  { %v325_v35 = vadd.f32 %v321_v34, %v144_v21  ;;  %v894_v36 = vpop.f32.mrb[1].mxu1 }
 0x1cb   :  { %1017 = vtanh.f32 %v325_v35 }
 0x1d5   :  { %v1018_v37 = vpop.eup %1017 }
 0x1d6   :  { %904 = vmatmul.mubr.msk.f32.vlgmr.msra.gmra.mrb[2].mxu1 %vm176_vm3, %v1018_v37 }
 0x1d7   :  { %981 = vmatpush3.bf16.msra.mxu1 %v1085_v7  ;;  %914 = vmatprep.mubr.msk.f32.mxu1 %vm1028_vm2, %v1029_v8 }
 0x1d8   :  { %982 = vmatprep.subr.bf16.mxu1 %v1027_v3 }
 0x1db   :  { %984 = vmatpush3.bf16.msra.mxu1 %v1102_v12 }
 0x1dc   :  { %991 = vmatprep.subr.bf16.mxu1 %v1027_v3 }
 0x2a9   :  { %v396_v38 = vpop.f32.mrb[2].mxu1 }
 0x2aa   :  { %v400_v39 = vadd.f32 %v396_v38, %v149_v19  ;;  %v905_v40 = vpop.f32.mrb[3].mxu1 }
 0x2ac   :  { %1019 = vtanh.f32 %v400_v39 }
 0x2b6   :  { %v1020_v41 = vpop.eup %1019 }
 0x2b7   :  { %915 = vmatmul.mubr.msk.f32.vlgmr.msra.gmra.mrb[4].mxu1 %vm176_vm3, %v1020_v41 }
 0x2b8   :  { %993 = vmatpush3.bf16.msra.mxu1 %v1085_v7  ;;  %936 = vmatprep.mubr.msk.f32.mxu1 %vm1028_vm2, %v1029_v8 }
 0x2b9   :  { %994 = vmatprep.subr.bf16.mxu1 %v1027_v3 }
 0x2bc   :  { %996 = vmatpush3.bf16.msra.mxu1 %v1102_v12 }
 0x2bd   :  { %1003 = vmatprep.subr.bf16.mxu1 %v1027_v3 }
 0x38a   :  { %v472_v42 = vpop.f32.mrb[4].mxu1 }
 0x38b   :  { %v476_v43 = vadd.f32 %v472_v42, %v154_v25  ;;  %v916_v44 = vpop.f32.mrb[5].mxu1 }
 0x38d   :  { %1021 = vtanh.f32 %v476_v43 }
 0x397   :  { %v1022_v45 = vpop.eup %1021 }
 0x398   :  { %926 = vmatmul.mubr.msk.f32.vlgmr.msra.gmra.mrb[8].mxu0 %vm176_vm3, %v1022_v45 }
 0x399   :  { %999 = vmatpush3.bf16.msra.mxu0 %v1085_v7  ;;  %947 = vmatprep.mubr.msk.f32.mxu0 %vm1028_vm2, %v1029_v8 }
 0x39a   :  { %1000 = vmatprep.subr.bf16.mxu0 %v1027_v3 }
 0x39d   :  { %1002 = vmatpush3.bf16.msra.mxu0 %v1102_v12 }
 0x46b   :  { %v547_v46 = vpop.f32.mrb[8].mxu0 }
 0x46c   :  { %v551_v47 = vadd.f32 %v547_v46, %v159_v23  ;;  %v927_v48 = vpop.f32.mrb[9].mxu0 }
 0x46e   :  { %1023 = vtanh.f32 %v551_v47 }
 0x478   :  { %v1024_v49 = vpop.eup %1023 }
 0x479   :  { %937 = vmatmul.mubr.msk.f32.vlgmr.msra.gmra.mrb[6].mxu1 %vm176_vm3, %v1024_v49 }
 0x47a   :  { %958 = vmatprep.mubr.msk.f32.mxu1 %vm1028_vm2, %v1029_v8  ;;  %1005 = vmatpush3.bf16.msra.mxu1 %v1004_v52 }
 0x47b   :  { %1006 = vmatprep.subr.bf16.mxu1 %v1027_v3 }
 0x47e   :  { %1008 = vmatpush3.bf16.msra.mxu1 %v1007_v60 }
 0x54c   :  { %v622_v53 = vpop.f32.mrb[6].mxu1 }
 0x54d   :  { %v626_v54 = vadd.f32 %v622_v53, %v164_v29  ;;  %v938_v55 = vpop.f32.mrb[7].mxu1 }
 0x54f   :  { %v627_v56 = vadd.f32 %v626_v54, %v400_v39 }
 0x551   :  { %1025 = vtanh.f32 %v627_v56 }
 0x55b   :  { %v1026_v57 = vpop.eup %1025 }
 0x55c   :  { %948 = vmatmul.mubr.msk.f32.vlgmr.msra.gmra.mrb[10].mxu0 %vm176_vm3, %v1026_v57 }
 0x62f   :  { %v698_v61 = vpop.f32.mrb[10].mxu0 }
 0x630   :  { %v702_v62 = vadd.f32 %v698_v61, %v1140_v27  ;;  %v949_v63 = vpop.f32.mrb[11].mxu0 }
 0x632   :  { %959 = vmatmul.mubr.msk.f32.vlgmr.msra.gmra.mrb[8].mxu1 %vm176_vm3, %v702_v62 }
 0x705   :  { %v783_v1 = vpop.f32.mrb[8].mxu1 }
 0x706   :  { %v784_v2 = vadd.f32 %v808_v0, %v783_v1  ;;  %v960_v3 = vpop.f32.mrb[9].mxu1 }
 0x708   :  { %787 = vst [vmem:[%s1200_s6] sm:$0xff] %v784_v2 }

</bundles_post_ra>
